<compile_context>
chip_gen: v5e
topology: v5e:2x2
jax: 0.10.0
libtpu: 0.0.40
codegen_flags: <defaults>
</compile_context>

<pallas_src>
import functools

import numpy as np
import jax
import jax.numpy as jnp
from jax.experimental import pallas as pl
from jax.experimental.pallas import tpu as pltpu


def nex_kernel(slab_ref, out_ref, *, k, alpha, sigma):
    slab = slab_ref[...]                                     # (SUB, 128) f32, one slab
    r_row = slab[0:1, :]                                     # (1, 128): R[j] in lanes < k
    w_row = slab[1:2, 0:k]                                   # (1, k): normalized weights
    r_col = slab[0:k, 127:128]                               # (k, 1): R[i] on sublanes

    # Stable tie-break mask i <= j, rebuilt in-kernel (VPU iota; no extra HBM input).
    i_idx = jax.lax.broadcasted_iota(jnp.int32, (k, 128), 0)
    j_idx = jax.lax.broadcasted_iota(jnp.int32, (k, 128), 1)
    tri = i_idx <= j_idx

    # rank(i) <= rank(j) (stable): R[i] < R[j]  or  (R[i] == R[j] and i <= j)
    r_i = jnp.broadcast_to(r_col, (k, 128))
    r_j = jnp.broadcast_to(r_row, (k, 128))
    mask = ((r_i < r_j) | ((r_i == r_j) & tri)).astype(jnp.float32)

    # c[j] = sum_i w_norm[i] * mask[i, j] — one MXU matmul (the MXU is otherwise idle).
    # TODO(synk): for k >= 128, tile j over a grid axis marked "parallel" (so v7x's two
    # TensorCores split it), keep any reduction axis last/"arbitrary", and regenerate the
    # iota mask per j-tile instead of materializing an (N, N) block (v7x has 64 MiB VMEM).
    c = jnp.dot(w_row, mask, preferred_element_type=jnp.float32,
                precision=jax.lax.Precision.HIGHEST)         # (1, 128)

    # Softmax over the k valid lanes, then the soft weighted quantile.
    lane = jax.lax.broadcasted_iota(jnp.int32, (1, 128), 1)
    resi = c - (1.0 - alpha)
    logits = jnp.where(lane < k, -(resi * resi) * (1.0 / sigma), -jnp.inf)
    m = jnp.max(logits, axis=1, keepdims=True)
    e = jnp.exp(logits - m)                                  # invalid lanes -> exp(-inf) = 0
    sw = e / jnp.sum(e, axis=1, keepdims=True)               # (1, 128)
    qhat = jnp.sum(r_row * sw, axis=1, keepdims=True)        # (1, 1); invalid lanes add 0

    out_ref[...] = jnp.broadcast_to(qhat, out_ref.shape)     # full-tile unmasked store


class NexModelPallas:
    def __init__(self, k, alpha, sigma=0.01):
        assert 1 <= k <= 126, "this packed single-slab kernel supports k <= 126"
        self.k = int(k)
        self.alpha = float(alpha)
        self.sigma = float(sigma)
        rho = 0.99
        initals = rho ** np.arange(k, 0, -1)
        # deterministic parameter init, identical to the torch module
        self.weights = jnp.asarray(initals, dtype=jnp.float32)
        # weights are fixed after construction -> hoist sigmoid / normalize out of the
        # kernel's critical path (recompute per call if the weights are ever trained).
        w_sig = jax.nn.sigmoid(self.weights)
        self.weights_normalized = w_sig / (jnp.sum(w_sig) + 1.0)

        self._sub = max(8, ((self.k + 7) // 8) * 8)          # sublane-padded slab rows
        kern = functools.partial(nex_kernel, k=self.k, alpha=self.alpha, sigma=self.sigma)
        self._pallas_fn = pl.pallas_call(
            kern,
            out_shape=jax.ShapeDtypeStruct((8, 128), jnp.float32),
            in_specs=[pl.BlockSpec(memory_space=pltpu.MemorySpace.VMEM)],
            out_specs=pl.BlockSpec(memory_space=pltpu.MemorySpace.VMEM),
        )
        # One dispatch per call: gather + packing + kernel + scalar slice under one jit.
        self._forward = jax.jit(self._forward_impl)
        # TODO(synk): if many calibration sets are evaluated, batch them into one
        # pallas_call with a leading "parallel" grid axis to amortize dispatch and use
        # both v7x TensorCores.

    def _forward_impl(self, cal_smx, cal_labels, w_norm):
        # label-shape handling (static under jit), matches the torch branching
        if cal_labels.ndim == 1:
            labels = cal_labels
        elif cal_labels.shape[1] >= 2:
            labels = jnp.argmax(cal_labels, axis=1)
        else:
            labels = cal_labels[:, 0]
        labels = labels.astype(jnp.int32)

        n = cal_smx.shape[0]
        smx = cal_smx.astype(jnp.float32)
        # label gather hoisted out of the kernel: only n of the n*C scores are used
        R = smx[jnp.arange(n), labels]                       # (n,)

        # pack everything into one contiguous slab -> a single DMA into VMEM
        slab = jnp.zeros((self._sub, 128), jnp.float32)
        slab = slab.at[0, :n].set(R)                         # R, lane-row (sublane 0)
        slab = slab.at[1, :n].set(w_norm)                    # w_norm, lane-row (sublane 1)
        slab = slab.at[:n, 127].set(R)                       # R, sublane-column (lane 127)

        out = self._pallas_fn(slab)
        qhat = out[0, 0]
        return qhat, qhat

    def __call__(self, cal_smx, cal_labels):
        assert cal_smx.shape[0] == self.k, "number of calibration samples must equal k"
        return self._forward(cal_smx, cal_labels, self.weights_normalized)


def nex_reference(cal_smx, cal_labels, weights, alpha, sigma):
    """Pure-JAX reference mirroring the torch forward (for correctness check)."""
    if cal_labels.ndim == 1:
        labels = cal_labels
    elif cal_labels.shape[1] >= 2:
        labels = jnp.argmax(cal_labels, axis=1)
    else:
        labels = cal_labels[:, 0]
    R = cal_smx[jnp.arange(cal_smx.shape[0]), labels]
    ord_R = jnp.argsort(R)
    R_sort = R[ord_R]
    w_sig = jax.nn.sigmoid(weights)
    w_norm = w_sig / (jnp.sum(w_sig) + 1.0)
    wc = jnp.cumsum(w_norm[ord_R])
    resi = wc - (1.0 - alpha)
    sw = jax.nn.softmax(-resi ** 2 / sigma)
    return jnp.sum(R_sort * sw)


if __name__ == "__main__":
    k = 8          # number of calibration samples (== weight vector length)
    C = 4          # number of classes
    alpha = 0.1
    sigma = 0.01

    key = jax.random.PRNGKey(0)
    k1, k2 = jax.random.split(key)
    cal_smx = jax.nn.softmax(jax.random.normal(k1, (k, C), dtype=jnp.float32), axis=1)
    cal_labels = jax.random.randint(k2, (k,), 0, C)

    model = NexModelPallas(k, alpha, sigma)
    qhat, qhat2 = model(cal_smx, cal_labels)
    qhat = jax.block_until_ready(qhat)

    ref = nex_reference(cal_smx, cal_labels, model.weights, alpha, sigma)
    np.testing.assert_allclose(np.asarray(qhat), np.asarray(ref), rtol=1e-4, atol=1e-5)
    np.testing.assert_allclose(np.asarray(qhat2), np.asarray(qhat))

    print("KERNEL_OK")
</pallas_src>

<mosaic_0001>
module attributes {stable_mosaic.version = 11 : i64} {
  func.func @nex_kernel(%arg0: memref<8x128xf32, #tpu.memory_space<vmem>>, %arg1: memref<8x128xf32, #tpu.memory_space<vmem>>) attributes {dimension_semantics = [], scalar_prefetch = 0 : i64, scratch_operands = 0 : i64, tpu.core_type = #tpu.core_type<tc>} {
    %c0 = arith.constant 0 : index
    %c0_0 = arith.constant 0 : index
    %0 = vector.load %arg0[%c0, %c0_0] : memref<8x128xf32, #tpu.memory_space<vmem>>, vector<8x128xf32>
    %1 = vector.extract_strided_slice %0 {offsets = [0, 0], sizes = [1, 128], strides = [1, 1]} : vector<8x128xf32> to vector<1x128xf32>
    %2 = vector.extract_strided_slice %0 {offsets = [1, 0], sizes = [1, 8], strides = [1, 1]} : vector<8x128xf32> to vector<1x8xf32>
    %3 = vector.extract_strided_slice %0 {offsets = [0, 127], sizes = [8, 1], strides = [1, 1]} : vector<8x128xf32> to vector<8x1xf32>
    %4 = tpu.iota {dimensions = array<i32: 0>} : vector<8x128xi32>
    %5 = tpu.iota {dimensions = array<i32: 1>} : vector<8x128xi32>
    %6 = arith.cmpi sle, %4, %5 : vector<8x128xi32>
    %7 = vector.shape_cast %3 : vector<8x1xf32> to vector<8x1xf32>
    %8 = vector.broadcast %7 : vector<8x1xf32> to vector<8x128xf32>
    %9 = vector.shape_cast %1 : vector<1x128xf32> to vector<1x128xf32>
    %10 = vector.broadcast %9 : vector<1x128xf32> to vector<8x128xf32>
    %11 = arith.cmpf olt, %8, %10 : vector<8x128xf32>
    %12 = arith.cmpf oeq, %8, %10 : vector<8x128xf32>
    %13 = arith.andi %12, %6 : vector<8x128xi1>
    %14 = arith.ori %11, %13 : vector<8x128xi1>
    %15 = arith.extui %14 : vector<8x128xi1> to vector<8x128xi32>
    %16 = arith.sitofp %15 : vector<8x128xi32> to vector<8x128xf32>
    %cst = arith.constant dense<0.000000e+00> : vector<1x128xf32>
    %17 = tpu.matmul %2, %16, %cst {dimension_numbers = #tpu.dot_dimension_numbers<[1], [0], [0], [1], [0, 0, 1, 1], [], []>, precision = #tpu.contract_precision<fp32>} : vector<1x8xf32>, vector<8x128xf32>, vector<1x128xf32> -> vector<1x128xf32>
    %18 = tpu.iota {dimensions = array<i32: 1>} : vector<1x128xi32>
    %cst_1 = arith.constant 0.899999976 : f32
    %19 = vector.broadcast %cst_1 : f32 to vector<1x128xf32>
    %20 = arith.subf %17, %19 : vector<1x128xf32>
    %c8_i32 = arith.constant 8 : i32
    %21 = vector.broadcast %c8_i32 : i32 to vector<1x128xi32>
    %22 = arith.cmpi slt, %18, %21 : vector<1x128xi32>
    %23 = arith.mulf %20, %20 : vector<1x128xf32>
    %cst_2 = arith.constant 0.000000e+00 : f32
    %24 = vector.broadcast %cst_2 : f32 to vector<1x128xf32>
    %25 = arith.subf %24, %23 : vector<1x128xf32>
    %cst_3 = arith.constant 1.000000e+02 : f32
    %26 = vector.broadcast %cst_3 : f32 to vector<1x128xf32>
    %27 = arith.mulf %25, %26 : vector<1x128xf32>
    %cst_4 = arith.constant 0xFF800000 : f32
    %28 = vector.broadcast %cst_4 : f32 to vector<1x128xf32>
    %29 = arith.select %22, %27, %28 : vector<1x128xi1>, vector<1x128xf32>
    %cst_5 = arith.constant dense<0xFF800000> : vector<1xf32>
    %30 = vector.multi_reduction <maximumf>, %29, %cst_5 [1] : vector<1x128xf32> to vector<1xf32>
    %31 = vector.shape_cast %30 : vector<1xf32> to vector<1x1xf32>
    %32 = vector.broadcast %31 : vector<1x1xf32> to vector<1x128xf32>
    %33 = arith.subf %29, %32 : vector<1x128xf32>
    %34 = math.exp %33 : vector<1x128xf32>
    %cst_6 = arith.constant dense<0.000000e+00> : vector<1xf32>
    %35 = vector.multi_reduction <add>, %34, %cst_6 [1] : vector<1x128xf32> to vector<1xf32>
    %36 = vector.shape_cast %35 : vector<1xf32> to vector<1x1xf32>
    %37 = vector.broadcast %36 : vector<1x1xf32> to vector<1x128xf32>
    %38 = arith.divf %34, %37 : vector<1x128xf32>
    %39 = arith.mulf %1, %38 : vector<1x128xf32>
    %cst_7 = arith.constant dense<0.000000e+00> : vector<1xf32>
    %40 = vector.multi_reduction <add>, %39, %cst_7 [1] : vector<1x128xf32> to vector<1xf32>
    %41 = vector.shape_cast %40 : vector<1xf32> to vector<1x1xf32>
    %42 = vector.shape_cast %41 : vector<1x1xf32> to vector<1x1xf32>
    %43 = vector.broadcast %42 : vector<1x1xf32> to vector<8x128xf32>
    %c0_8 = arith.constant 0 : index
    %c0_9 = arith.constant 0 : index
    %44 = vector.load %arg1[%c0_8, %c0_9] : memref<8x128xf32, #tpu.memory_space<vmem>>, vector<8x128xf32>
    tpu.vector_store %arg1[%c0_8, %c0_9], %43 {strides = array<i32>} : memref<8x128xf32, #tpu.memory_space<vmem>>, vector<8x128xf32>,
    return
  }
}

</mosaic_0001>

<bundles_post_ra>
// kernel: _forward_impl.1
= control target key start
LH: loop header
LB: loop body
LE: loop exit
PB: predicated region body
PF: predicated region fallthrough
CT: control target
= control target key end

     0   :  { %v230_v0 = vmov 127   ;;  %vm27_vm0 = vcmask 64512   ;;  %v9_v6 = vlaneseq  ;;  %v231_v15 = vmov 1.0   ;;  %s270_s0 = inlined_call_operand.vmem [shape: f32[8,128], index: 0, kind: input, shape index: {}]   ;;  %s271_s1 = inlined_call_operand.vmem [shape: f32[8,128], index: 1, kind: output, shape index: {}]  }
   0x1   :  { %225 = vset.pattern.permute.xlu0 %v230_v0  ;;  %v246_v1 = vld [vmem:[%s270_s0] sm:$0xff]  ;;  %v232_v16 = vmov 0.0   ;;  %vm182_vm7 = vcmask 1040384  }
   0x2   :  { %16 = vperm.xlu0 %225, %v246_v1   ;;  %v26_v2 = vrot.slane %v246_v1, 1  ;;  %v10_v8 = vshrl.u32 %v9_v6, 7  ;;  %v12_v9 = vand.u32 127, %v9_v6  ;;  %v19_v10 = vperm.slane %v246_v1, 0 }
   0x4   :  { %v28_v3 = vsel %vm27_vm0, %v26_v2, 0  ;;  %vm13_vm1 = vcmp.le.s32.totalorder %v10_v8, %v12_v9  ;;  %vm177_vm6 = vcmp.lt.s32.totalorder %v12_v9, 8 }
   0x5   :  { %v47_v4 = vand.u32 4294901760, %v28_v3 }
   0x7   :  { %v48_v5 = vsub.f32 %v28_v3, %v47_v4 }
   0x9   :  { %v49_v7 = vand.u32 4294901760, %v48_v5 }
   0xb   :  { %v50_v11 = vsub.f32 %v48_v5, %v49_v7 }
   0xd   :  { %v51_v13 = vand.u32 4294901760, %v50_v11 }
  0x74   :  { %v17_v12 = vpop.permute.xlu0 %16 }
  0x75   :  { %vm20_vm2 = vcmp.lt.f32.partialorder %v17_v12, %v19_v10  ;;  %vm21_vm3 = vcmp.eq.f32.partialorder %v17_v12, %v19_v10 }
  0x76   :  { %vm22_vm4 = vmand %vm21_vm3, %vm13_vm1 }
  0x77   :  { %vm251_vm5 = vmor %vm20_vm2, %vm22_vm4 }
  0x78   :  { %218 = vmatpush.msk.msra.mxu0 %vm251_vm5, %v231_v15  ;;  %219 = vmatpush.msk.msra.mxu3 %vm251_vm5, %v231_v15  ;;  %v217_v17 = vsel %vm251_vm5, 1.0, %v232_v16 }
  0x79   :  { %v72_v18 = vsub.f32 %v217_v17, %v217_v17  ;;  %52 = vmatmul.f32.vlgmr.msra.gmra.mxu0 %v51_v13  ;;  %126 = vmatmul.f32.vlgmr.msra.gmra.mxu3 %v49_v7 }
  0x7b   :  { %99 = vmatpush.msra.mxu2 %v72_v18  ;;  %v73_v19 = vand.u32 4294901760, %v72_v18 }
  0x7c   :  { %102 = vmatmul.f32.vlgmr.msra.gmra.mxu2 %v48_v5 }
  0x7d   :  { %148 = vmatpush.msrb.mxu0 %v73_v19  ;;  %v74_v20 = vsub.f32 %v72_v18, %v73_v19 }
  0x7f   :  { %v75_v21 = vand.u32 4294901760, %v74_v20 }
  0x81   :  { %76 = vmatpush.msra.mxu1 %v75_v21  ;;  %150 = vmatmul.f32.vlgmr.msrb.gmra.mxu0 %v47_v4 }
  0x82   :  { %78 = vmatmul.f32.vlgmr.msra.gmra.mxu1 %v47_v4 }
  0x83   :  { %220 = vmatpush.msk.msrb.mxu1 %vm251_vm5, %v231_v15 }
  0x8a   :  { %172 = vmatmul.f32.vlgmr.msrb.gmra.mxu1 %v47_v4 }
  0xf6   :  { %v53_v22 = vpop.f32.mrf.mxu0 }
  0xfc   :  { %v127_v26 = vpop.f32.mrf.mxu3 }
  0xfe   :  { %v151_v28 = vpop.f32.mrf.mxu0 }
  0xff   :  { %v79_v23 = vpop.f32.mrf.mxu1  ;;  %v103_v24 = vpop.f32.mrf.mxu2 }
 0x100   :  { %v80_v25 = vadd.f32 %v79_v23, %v53_v22 }
 0x102   :  { %v104_v27 = vadd.f32 %v103_v24, %v80_v25 }
 0x104   :  { %v128_v29 = vadd.f32 %v127_v26, %v104_v27 }
 0x106   :  { %v152_v30 = vadd.f32 %v151_v28, %v128_v29 }
 0x107   :  { %v173_v31 = vpop.f32.mrf.mxu1 }
 0x108   :  { %v174_v32 = vadd.f32 %v173_v31, %v152_v30 }
 0x10a   :  { %v221_v33 = vadd.f32 -0.9, %v174_v32 }
 0x10c   :  { %v178_v34 = vmul.f32 %v221_v33, %v221_v33 }
 0x10e   :  { %v179_v35 = vsub.f32 0.0, %v178_v34 }
 0x110   :  { %v180_v36 = vmul.f32 100.0, %v179_v35 }
 0x112   :  { %v181_v37 = vsel %vm177_vm6, %v180_v36, -inf }
 0x113   :  { %v183_v38 = vsel %vm182_vm7, %v181_v37, -inf }
 0x114   :  { %184 = vmax.xlane.f32.xlu0 %v183_v38 }
 0x187   :  { %v185_v39 = vpop.xlane.xlu0 %184 }
 0x188   :  { %v186_v40 = vsub.f32 %v181_v37, %v185_v39 }
 0x18a   :  { %v187_v41 = vmul.f32 1.442695, %v186_v40 }
 0x18c   :  { %226 = vpow2.f32 %v187_v41 }
 0x192   :  { %v227_v42 = vpop.eup %226 }
 0x193   :  { %v189_v43 = vsel %vm182_vm7, %v227_v42, 0.0 }
 0x194   :  { %190 = vadd.xlane.f32.xlu1 %v189_v43 }
 0x207   :  { %v191_v44 = vpop.xlane.xlu1 %190 }
 0x208   :  { %228 = vrcp.f32 %v191_v44  ;;  %v203_v48 = vand.u32 2147483648, %v191_v44  ;;  %v201_v50 = vand.u32 2147483647, %v191_v44  ;;  %vm197_vm9 = vweird.f32 %v191_v44 }
 0x20a   :  { %v204_v52 = vor.u32 1.1754944e-38, %v203_v48  ;;  %vm202_vm11 = vcmp.eq.f32.partialorder %v201_v50, 8.507059e+37 }
 0x20e   :  { %v229_v45 = vpop.eup %228 }
 0x20f   :  { %v193_v46 = vmul.f32 %v229_v45, %v191_v44  ;;  %vm198_vm8 = vweird.f32 %v229_v45 }
 0x210   :  { %vm199_vm10 = vmor %vm197_vm9, %vm198_vm8 }
 0x211   :  { %v194_v47 = vsub.f32 1.0, %v193_v46 }
 0x213   :  { %v195_v49 = vmul.f32 %v229_v45, %v194_v47 }
 0x215   :  { %v196_v51 = vadd.f32 %v229_v45, %v195_v49 }
 0x217   :  { %v200_v53 = vsel %vm199_vm10, %v229_v45, %v196_v51 }
 0x218   :  { %v205_v54 = vsel %vm202_vm11, %v204_v52, %v200_v53 }
 0x219   :  { %v206_v55 = vmul.f32 %v227_v42, %v205_v54 }
 0x21b   :  { %v207_v56 = vmul.f32 %v206_v55, %v246_v1 }
 0x21d   :  { %v208_v57 = vsel %vm182_vm7, %v207_v56, 0.0 }
 0x21e   :  { %209 = vadd.xlane.f32.xlu1 %v208_v57 }
 0x291   :  { %v210_v58 = vpop.xlane.xlu1 %209 }
 0x292   :  { %v211_v59 = vperm.slane %v210_v58, 0 }
 0x294   :  { %212 = vst [vmem:[%s271_s1] sm:$0xff] %v211_v59 }

</bundles_post_ra>
